<compile_context>
chip_gen: v7x
topology: tpu7x:2x2x1
jax: 0.10.0
libtpu: 0.0.40
codegen_flags: <defaults>
</compile_context>

<pallas_src>
import functools

import jax
import jax.numpy as jnp
import numpy as np
from jax.experimental import pallas as pl
from jax.experimental.pallas import tpu as pltpu

_BN_EPS = 1e-5


# ---------------------------------------------------------------------------
# pltpu.roll direction probe (one tiny kernel, cached).  Retained on purpose
# (review: not a steady-state cost) so the circular-tap construction is robust
# to the roll sign convention of the installed JAX/Mosaic; runs once at trace
# time on an 8x128 int32 tile.
# ---------------------------------------------------------------------------
@functools.lru_cache(maxsize=None)
def _roll_sign():
    def k(x_ref, o_ref):
        o_ref[...] = pltpu.roll(x_ref[...], 1, axis=1)

    x = jnp.broadcast_to(jnp.arange(128, dtype=jnp.int32), (8, 128))
    out = pl.pallas_call(
        k, out_shape=jax.ShapeDtypeStruct((8, 128), jnp.int32))(x)
    # jnp.roll convention: out[0, 0] == 127 after shifting by +1.
    return 1 if int(out[0, 0]) == 127 else -1


# ---------------------------------------------------------------------------
# In-kernel helpers
# ---------------------------------------------------------------------------
def _circular_taps_matmul(x, w_ref, B, cin, H, W, roll_sign):
    """3x3 circular-conv via 9 in-register taps + accumulated MXU dots.

    x     : (B*cin, H*W) f32 slab, B images stacked along sublanes.
    w_ref : (9, cout, cin) bf16 packed weights, tap index t = (dy+1)*3+(dx+1).
    Returns a list of B f32 (cout, H*W) conv outputs.
    """
    hw = H * W
    cout = w_ref.shape[1]

    lane = jax.lax.broadcasted_iota(jnp.int32, (1, hw), 1)
    col = lane % W
    row = (lane // W) % H
    at_x0, at_xl = col == 0, col == W - 1
    at_y0, at_yl = row == 0, row == H - 1

    def rl(a, s):
        # lane rotation with jnp.roll semantics (sign fixed by the probe)
        return pltpu.roll(a, (roll_sign * s) % hw, axis=1)

    def shift_x(a, dx):   # value_at(y, x) = a(y, (x+dx) mod W)
        if dx == 0:
            return a
        if dx > 0:
            return jnp.where(at_xl, rl(a, W - 1), rl(a, -1))
        return jnp.where(at_x0, rl(a, -(W - 1)), rl(a, 1))

    def shift_y(a, dy):   # value_at(y, x) = a((y+dy) mod H, x)
        if dy == 0:
            return a
        if dy > 0:
            return jnp.where(at_yl, rl(a, (H - 1) * W), rl(a, -W))
        return jnp.where(at_y0, rl(a, -(H - 1) * W), rl(a, W))

    accs = [jnp.zeros((cout, hw), jnp.float32) for _ in range(B)]
    t = 0
    for dy in (-1, 0, 1):
        xr = shift_y(x, dy)
        for dx in (-1, 0, 1):
            # bf16 only at the MXU operand (rolls/selects stay f32: v5e-safe).
            tap = shift_x(xr, dx).astype(jnp.bfloat16)
            w_t = w_ref[t]                                   # (cout, cin)
            for b in range(B):
                accs[b] = accs[b] + jnp.dot(
                    w_t, tap[b * cin:(b + 1) * cin, :],
                    preferred_element_type=jnp.float32)
            t += 1
    return accs


def _write_conv_outputs(accs, y_ref, sum_ref, sumsq_ref):
    """Store bf16 conv outputs + per-channel BN partial stats (f32)."""
    cout = accs[0].shape[0]
    s = jnp.zeros((cout, 1), jnp.float32)
    ss = jnp.zeros((cout, 1), jnp.float32)
    for b, acc in enumerate(accs):
        y_ref[pl.ds(b * cout, cout), :] = acc.astype(y_ref.dtype)
        s = s + jnp.sum(acc, axis=1, keepdims=True)
        ss = ss + jnp.sum(acc * acc, axis=1, keepdims=True)
    sum_ref[0] = s
    sumsq_ref[0] = ss


# ---------------------------------------------------------------------------
# Pallas kernels
# ---------------------------------------------------------------------------
def _conv1_kernel(x2_ref, x1_ref, up_ref, w_ref,
                  y_ref, sum_ref, sumsq_ref, *, B, c1, c2, H, W, roll_sign):
    """Fused upsample(+circular pad) + channel concat + 3x3 circular conv."""
    cin = c1 + c2
    # Bilinear 2x upsample (align_corners=True) + circular pad of x1, folded
    # into one interpolation matrix: (B*c1, h1*w1) @ (h1*w1, H*W).
    x1u = jnp.dot(x1_ref[...], up_ref[...],
                  preferred_element_type=jnp.float32)        # (B*c1, H*W)
    x2 = x2_ref[...]                                         # (B*c2, H*W)
    # torch.cat([x2, x1], dim=1), per image, assembled in VMEM (no HBM pass).
    pieces = []
    for b in range(B):
        pieces.append(x2[b * c2:(b + 1) * c2, :])
        pieces.append(x1u[b * c1:(b + 1) * c1, :])
    x = jnp.concatenate(pieces, axis=0)                      # (B*cin, H*W)

    accs = _circular_taps_matmul(x, w_ref, B, cin, H, W, roll_sign)
    _write_conv_outputs(accs, y_ref, sum_ref, sumsq_ref)


def _conv2_kernel(x_ref, w_ref, scale_ref, shift_ref,
                  y_ref, sum_ref, sumsq_ref, *, B, cin, H, W, roll_sign):
    """conv1's BatchNorm+ReLU (fused pre-activation) + 3x3 circular conv."""
    x = jnp.maximum(
        x_ref[...].astype(jnp.float32) * scale_ref[...] + shift_ref[...], 0.0)
    accs = _circular_taps_matmul(x, w_ref, B, cin, H, W, roll_sign)
    _write_conv_outputs(accs, y_ref, sum_ref, sumsq_ref)


def _affine_relu_kernel(y_ref, scale_ref, shift_ref, o_ref):
    """Finalize: BatchNorm (as per-channel scale/shift) + ReLU, lane-dense."""
    o_ref[...] = jnp.maximum(
        y_ref[...].astype(jnp.float32) * scale_ref[...] + shift_ref[...], 0.0)


# ---------------------------------------------------------------------------
# Host-side helpers
# ---------------------------------------------------------------------------
def _interp_matrix(n_in, n_out):
    # 1D linear interpolation matrix, align_corners=True semantics.
    if n_in == 1:
        return np.ones((n_out, 1), np.float32)
    src = np.arange(n_out, dtype=np.float64) * (n_in - 1) / (n_out - 1)
    i0 = np.clip(np.floor(src).astype(np.int64), 0, n_in - 1)
    i1 = np.minimum(i0 + 1, n_in - 1)
    frac = src - i0
    m = np.zeros((n_out, n_in), np.float64)
    m[np.arange(n_out), i0] += 1.0 - frac
    m[np.arange(n_out), i1] += frac
    return m.astype(np.float32)


def _upsample_pad_matrix(h1, w1, H, W):
    """(h1*w1, H*W) matrix implementing bilinear 2x upsample
    (align_corners=True) followed by F.pad(..., mode='circular') to (H, W)
    as one right-multiply of the channel-major (C, h1*w1) slab."""
    h2, w2 = 2 * h1, 2 * w1
    dy, dx = H - h2, W - w2
    assert dy >= 0 and dx >= 0, "x2 must be at least as large as upsampled x1"
    ah = _interp_matrix(h1, h2)                        # (h2, h1)
    aw = _interp_matrix(w1, w2)                        # (w2, w1)
    rows = (np.arange(H) - dy // 2) % h2
    cols = (np.arange(W) - dx // 2) % w2
    m = np.einsum("yi,xj->ijyx", ah[rows], aw[cols])   # (h1, w1, H, W)
    return np.ascontiguousarray(m.reshape(h1 * w1, H * W)).astype(np.float32)


def _pack_conv_weights(w):
    # (Cout, Cin, 3, 3) -> (9, Cout, Cin) bf16, tap index t = ky*3 + kx
    # (matches the in-kernel (dy, dx) tap ordering).
    cout, cin = w.shape[:2]
    return jnp.transpose(w, (2, 3, 0, 1)).reshape(9, cout, cin).astype(
        jnp.bfloat16)


def _batch_block(n, cap=8):
    """Images per grid step: largest divisor of n that is <= cap."""
    b = 1
    for d in range(1, min(n, cap) + 1):
        if n % d == 0:
            b = d
    return b


def _bn_scale_shift(sums, sumsqs, gamma, beta, count):
    # Training-mode BatchNorm: biased batch variance over (N, H, W).
    # One-pass sum/sumsq in f32 (clamp guards cancellation at these
    # magnitudes; use a shifted/Welford accumulation for very large N*H*W).
    total = jnp.sum(sums, axis=0)                  # (C, 1)
    total_sq = jnp.sum(sumsqs, axis=0)             # (C, 1)
    mean = total / count
    var = jnp.maximum(total_sq / count - mean * mean, 0.0)
    scale = gamma.reshape(-1, 1) * jax.lax.rsqrt(var + _BN_EPS)
    shift = beta.reshape(-1, 1) - mean * scale
    return scale, shift


# ---------------------------------------------------------------------------
# pallas_call wrappers
# ---------------------------------------------------------------------------
def _conv1(x2_slab, x1_slab, up_mat, w9, n, B, H, W):
    c2 = x2_slab.shape[0] // n
    c1 = x1_slab.shape[0] // n
    h1w1 = x1_slab.shape[1]
    cout = w9.shape[1]
    hw = H * W
    nb = n // B
    kern = functools.partial(_conv1_kernel, B=B, c1=c1, c2=c2, H=H, W=W,
                             roll_sign=_roll_sign())
    return pl.pallas_call(
        kern,
        grid=(nb,),
        in_specs=[
            pl.BlockSpec((B * c2, hw), lambda i: (i, 0)),
            pl.BlockSpec((B * c1, h1w1), lambda i: (i, 0)),
            pl.BlockSpec((h1w1, hw), lambda i: (0, 0)),
            pl.BlockSpec((9, cout, c1 + c2), lambda i: (0, 0, 0)),
        ],
        out_specs=[
            pl.BlockSpec((B * cout, hw), lambda i: (i, 0)),
            pl.BlockSpec((1, cout, 1), lambda i: (i, 0, 0)),
            pl.BlockSpec((1, cout, 1), lambda i: (i, 0, 0)),
        ],
        out_shape=[
            jax.ShapeDtypeStruct((n * cout, hw), jnp.bfloat16),
            jax.ShapeDtypeStruct((nb, cout, 1), jnp.float32),
            jax.ShapeDtypeStruct((nb, cout, 1), jnp.float32),
        ],
        compiler_params=pltpu.CompilerParams(
            dimension_semantics=("parallel",)),
    )(x2_slab, x1_slab, up_mat, w9)


def _conv2(y1_slab, w9, scale, shift, n, B, H, W):
    cin = y1_slab.shape[0] // n
    cout = w9.shape[1]
    hw = H * W
    nb = n // B
    scale_t = jnp.tile(scale, (B, 1))              # (B*cin, 1), per-image tile
    shift_t = jnp.tile(shift, (B, 1))
    kern = functools.partial(_conv2_kernel, B=B, cin=cin, H=H, W=W,
                             roll_sign=_roll_sign())
    return pl.pallas_call(
        kern,
        grid=(nb,),
        in_specs=[
            pl.BlockSpec((B * cin, hw), lambda i: (i, 0)),
            pl.BlockSpec((9, cout, cin), lambda i: (0, 0, 0)),
            pl.BlockSpec((B * cin, 1), lambda i: (0, 0)),
            pl.BlockSpec((B * cin, 1), lambda i: (0, 0)),
        ],
        out_specs=[
            pl.BlockSpec((B * cout, hw), lambda i: (i, 0)),
            pl.BlockSpec((1, cout, 1), lambda i: (i, 0, 0)),
            pl.BlockSpec((1, cout, 1), lambda i: (i, 0, 0)),
        ],
        out_shape=[
            jax.ShapeDtypeStruct((n * cout, hw), jnp.bfloat16),
            jax.ShapeDtypeStruct((nb, cout, 1), jnp.float32),
            jax.ShapeDtypeStruct((nb, cout, 1), jnp.float32),
        ],
        compiler_params=pltpu.CompilerParams(
            dimension_semantics=("parallel",)),
    )(y1_slab, w9, scale_t, shift_t)


def _affine_relu(y_slab, scale, shift, n, B, hw):
    c = y_slab.shape[0] // n
    nb = n // B
    scale_t = jnp.tile(scale, (B, 1))
    shift_t = jnp.tile(shift, (B, 1))
    return pl.pallas_call(
        _affine_relu_kernel,
        grid=(nb,),
        in_specs=[pl.BlockSpec((B * c, hw), lambda i: (i, 0)),
                  pl.BlockSpec((B * c, 1), lambda i: (0, 0)),
                  pl.BlockSpec((B * c, 1), lambda i: (0, 0))],
        out_specs=pl.BlockSpec((B * c, hw), lambda i: (i, 0)),
        out_shape=jax.ShapeDtypeStruct((n * c, hw), jnp.float32),
        compiler_params=pltpu.CompilerParams(
            dimension_semantics=("parallel",)),
    )(y_slab, scale_t, shift_t)


def up_forward(params, x1, x2):
    n, c1, h1, w1 = x1.shape
    n2, c2, H, W = x2.shape
    assert n == n2
    hw = H * W
    B = _batch_block(n)
    count = jnp.float32(n * hw)

    # Channel-major lane-dense slabs (free reshapes, no transposes anywhere).
    x1_slab = x1.reshape(n * c1, h1 * w1)
    x2_slab = x2.reshape(n * c2, hw)
    up_mat = jnp.asarray(_upsample_pad_matrix(h1, w1, H, W))

    w9_1 = _pack_conv_weights(params["w1"])
    w9_2 = _pack_conv_weights(params["w2"])
    cout = w9_2.shape[1]

    # Pass 1: fused upsample + pad + concat + conv1 + BN1 partial stats.
    y1, s1, ss1 = _conv1(x2_slab, x1_slab, up_mat, w9_1, n, B, H, W)
    sc1, sh1 = _bn_scale_shift(s1, ss1, params["g1"], params["b1"], count)

    # Pass 2: BN1+ReLU (fused pre-activation) + conv2 + BN2 partial stats.
    y2, s2, ss2 = _conv2(y1, w9_2, sc1, sh1, n, B, H, W)
    sc2, sh2 = _bn_scale_shift(s2, ss2, params["g2"], params["b2"], count)

    # Pass 3: BN2 + ReLU finalize.
    out = _affine_relu(y2, sc2, sh2, n, B, hw)     # (n*cout, hw) f32
    return out.reshape(n, cout, H, W)


def init_params(key, in_channels, out_channels):
    mid = in_channels // 2
    k1, k2, k3, k4, k5, k6 = jax.random.split(key, 6)
    return {
        "w1": jax.random.normal(k1, (mid, in_channels, 3, 3), jnp.float32)
        / np.sqrt(in_channels * 9.0),
        "w2": jax.random.normal(k2, (out_channels, mid, 3, 3), jnp.float32)
        / np.sqrt(mid * 9.0),
        "g1": 1.0 + 0.1 * jax.random.normal(k3, (mid,), jnp.float32),
        "b1": 0.1 * jax.random.normal(k4, (mid,), jnp.float32),
        "g2": 1.0 + 0.1 * jax.random.normal(k5, (out_channels,), jnp.float32),
        "b2": 0.1 * jax.random.normal(k6, (out_channels,), jnp.float32),
    }


# ---------------------------------------------------------------------------
# Pure-JAX reference (independent code path) for a numerical sanity check.
# ---------------------------------------------------------------------------
def _ref_up_forward(params, x1, x2):
    n, c1, h1, w1 = x1.shape
    ah = jnp.asarray(_interp_matrix(h1, 2 * h1))
    aw = jnp.asarray(_interp_matrix(w1, 2 * w1))
    x1u = jnp.einsum("ih,nchw->nciw", ah, x1)
    x1u = jnp.einsum("jw,nciw->ncij", aw, x1u)
    dy = x2.shape[2] - x1u.shape[2]
    dx = x2.shape[3] - x1u.shape[3]
    if dy or dx:
        x1u = jnp.pad(x1u, ((0, 0), (0, 0),
                            (dy // 2, dy - dy // 2),
                            (dx // 2, dx - dx // 2)), mode="wrap")
    x = jnp.concatenate([x2, x1u], axis=1)

    def conv_bn_relu(xi, wgt, g, b):
        xp = jnp.pad(xi, ((0, 0), (0, 0), (1, 1), (1, 1)), mode="wrap")
        y = jax.lax.conv_general_dilated(
            xp, wgt, window_strides=(1, 1), padding="VALID",
            dimension_numbers=("NCHW", "OIHW", "NCHW"))
        mean = jnp.mean(y, axis=(0, 2, 3), keepdims=True)
        var = jnp.mean((y - mean) ** 2, axis=(0, 2, 3), keepdims=True)
        yn = (y - mean) * jax.lax.rsqrt(var + _BN_EPS)
        yn = yn * g.reshape(1, -1, 1, 1) + b.reshape(1, -1, 1, 1)
        return jnp.maximum(yn, 0.0)

    hmid = conv_bn_relu(x, params["w1"], params["g1"], params["b1"])
    return conv_bn_relu(hmid, params["w2"], params["g2"], params["b2"])


if __name__ == "__main__":
    _roll_sign()  # prime the (cached) roll-convention probe eagerly

    key = jax.random.PRNGKey(0)
    kx1, kx2, kp = jax.random.split(key, 3)

    in_channels, out_channels = 16, 8
    # Standard UNet Up usage: x1 (deep feature, half spatial) and x2 (skip)
    # each carry in_channels // 2 channels so the concat has `in_channels`.
    x1 = jax.random.normal(kx1, (2, in_channels // 2, 8, 8), jnp.float32)
    x2 = jax.random.normal(kx2, (2, in_channels // 2, 16, 16), jnp.float32)
    params = init_params(kp, in_channels, out_channels)

    out = jax.jit(up_forward)(params, x1, x2)
    out = jax.block_until_ready(out)

    assert out.shape == (2, out_channels, 16, 16), out.shape
    assert bool(jnp.all(jnp.isfinite(out)))

    ref = _ref_up_forward(params, x1, x2)
    np.testing.assert_allclose(np.asarray(out), np.asarray(ref),
                               rtol=3e-2, atol=3e-2)
    print("KERNEL_OK")
</pallas_src>

<mosaic_0001>
module attributes {stable_mosaic.version = 11 : i64} {
  func.func @k(%arg0: memref<8x128xi32, #tpu.memory_space<vmem>>, %arg1: memref<8x128xi32, #tpu.memory_space<vmem>>) attributes {dimension_semantics = [], scalar_prefetch = 0 : i64, scratch_operands = 0 : i64, tpu.core_type = #tpu.core_type<tc>} {
    %c0 = arith.constant 0 : index
    %c0_0 = arith.constant 0 : index
    %0 = vector.load %arg0[%c0, %c0_0] : memref<8x128xi32, #tpu.memory_space<vmem>>, vector<8x128xi32>
    %c1_i32 = arith.constant 1 : i32
    %1 = tpu.dynamic_rotate %0 by %c1_i32 dim 1 : vector<8x128xi32>, i32 -> vector<8x128xi32>
    %c0_1 = arith.constant 0 : index
    %c0_2 = arith.constant 0 : index
    %2 = vector.load %arg1[%c0_1, %c0_2] : memref<8x128xi32, #tpu.memory_space<vmem>>, vector<8x128xi32>
    tpu.vector_store %arg1[%c0_1, %c0_2], %1 {strides = array<i32>} : memref<8x128xi32, #tpu.memory_space<vmem>>, vector<8x128xi32>,
    return
  }
}

</mosaic_0001>

<bundles_post_ra>
// kernel: tpu_custom_call.1
= control target key start
LH: loop header
LB: loop body
LE: loop exit
PB: predicated region body
PF: predicated region fallthrough
CT: control target
= control target key end

     0   :  { %6 = vsyncpa [#allocation3], 0  ;;  %s128_s0 = inlined_call_operand.hbm [shape: s32[8,128], index: 0, kind: input, shape index: {}]   ;;  %s129_s1 = inlined_call_operand.hbm [shape: s32[8,128], index: 1, kind: output, shape index: {}]  }
   0x1   :  { %7 = vsyncpa [#allocation4], 0  ;;  %s91_s6 = smov [#allocation2]   ;;  %s43_s10 = scalar_lea.hbm %s128_s0, 128 }
   0x2   :  { %s14_s7 = sshll.u32 %s91_s6, 4  ;;  %p44_p0 = scmp.ne.s32.totalorder %s128_s0, %s43_s10  ;;  %s15_s7 = int_to_ptr.vmem [resolvable:$true] %s14_s7 }
   0x3   :  { %p47_p1 = scmp.lt.u32.totalorder %s43_s10, %s128_s0 }
   0x5   :  { %p49_p2 = pnand %p47_p1, %p44_p0 }
   0x7   :  { %52 = shalt.err (!%p49_p2)
}
   0x8   :  { %s53_s15 = scalar_lea.vmem %s15_s7, 128  ;;  %p58_p4 = scmp.lt.s32.totalorder %s15_s7, %s15_s7 }
   0x9   :  { %p54_p3 = scmp.ne.s32.totalorder %s15_s7, %s53_s15  ;;  %p59_p5 = scmp.lt.s32.totalorder %s53_s15, %s53_s15 }
   0xb   :  { %p60_p6 = por %p59_p5, %p58_p4 }
   0xd   :  { %p61_p7 = pnand %p60_p6, %p54_p3 }
   0xf   :  { %64 = shalt.err (!%p61_p7)
}
  0x10   :  { %17 = dma.hbm_to_vmem [thread:$0]  %s128_s0, 128, %s15_s7, [#allocation3]  }
  0x11   :  { %87 = dma.done.wait [#allocation3], 128  }
  0x12   :  { %88 = vsyncadd [#allocation3], 4294967168  ;;  %v21_v0 = vld [vmem:[#allocation2] sm:$0xff]  ;;  %s92_s18 = smov 1   ;;  %s93_s19 = smov [#allocation5]  }
  0x13   :  { %22 = vrot.lane.b32.xlu0 %v21_v0, %s92_s18  ;;  %s31_s20 = sshll.u32 %s93_s19, 4  ;;  %s32_s20 = int_to_ptr.vmem [resolvable:$true] %s31_s20 }
  0x14   :  { %s65_s21 = scalar_lea.vmem %s32_s20, 128  ;;  %p70_p9 = scmp.lt.s32.totalorder %s32_s20, %s32_s20 }
  0x15   :  { %p66_p8 = scmp.ne.s32.totalorder %s32_s20, %s65_s21  ;;  %p71_p10 = scmp.lt.s32.totalorder %s65_s21, %s65_s21 }
  0x17   :  { %p72_p11 = por %p71_p10, %p70_p9 }
  0x19   :  { %p73_p12 = pnand %p72_p11, %p66_p8 }
  0x85   :  { %v23_v1 = vpop.permute.xlu0 %22 }
  0x86   :  { %24 = vst [vmem:[#allocation5] sm:$0xff] %v23_v1 }
  0x87   :  { %76 = shalt.err (!%p73_p12)
}
  0x88   :  { %s77_s0 = scalar_lea.hbm %s129_s1, 128 }
  0x89   :  { %p78_p13 = scmp.ne.s32.totalorder %s129_s1, %s77_s0  ;;  %p81_p0 = scmp.lt.u32.totalorder %s77_s0, %s129_s1 }
  0x8b   :  { %p83_p1 = pnand %p81_p0, %p78_p13 }
  0x8d   :  { %86 = shalt.err (!%p83_p1)
}
  0x8e   :  { %34 = dma.vmem_to_hbm [thread:$0]  %s32_s20, 128, %s129_s1, [#allocation4]  }
  0x8f   :  { %89 = dma.done.wait [#allocation4], 128  }
  0x90   :  { %90 = vsyncadd [#allocation4], 4294967168 }
  0x91   :  { %38 = vsyncpa [#allocation3], 1 }
  0x92   :  { %39 = vsyncpa [#allocation4], 1 }

</bundles_post_ra>
